<compile_context>
chip_gen: v7x
topology: tpu7x:2x2x1
jax: 0.10.0
libtpu: 0.0.40
codegen_flags: <defaults>
</compile_context>

<pallas_src>
import jax
import jax.numpy as jnp
from jax.experimental import pallas as pl
from jax.experimental.pallas import tpu as pltpu


def _pick_tile(n, max_tile, mult):
    """Largest multiple of `mult` that divides `n` and is <= max_tile, else n."""
    if n <= max_tile:
        return n
    t = (max_tile // mult) * mult
    while t >= mult:
        if n % t == 0:
            return t
        t -= mult
    return n


def _make_kernel(inv_t, scale, lamb, vos_mode, has_neg, labeled_neg,
                 tr, tc, c_anchor, c_total):
    inv_t = float(inv_t)
    scale = float(scale)
    lamb = float(lamb)

    def kernel(*refs):
        if has_neg:
            (arow_ref, acol_ref, labr_ref, labc_ref, neg_ref, out_ref,
             m_ref, e_ref, num_ref, cnt_ref, en_ref) = refs
        else:
            (arow_ref, acol_ref, labr_ref, labc_ref, out_ref,
             m_ref, e_ref, num_ref, cnt_ref) = refs

        r = pl.program_id(0)
        c = pl.program_id(1)

        @pl.when(c == 0)
        def _init():
            m_ref[...] = jnp.full_like(m_ref, -1e30)
            e_ref[...] = jnp.zeros_like(e_ref)
            num_ref[...] = jnp.zeros_like(num_ref)
            cnt_ref[...] = jnp.zeros_like(cnt_ref)
            if has_neg:
                en_ref[...] = jnp.zeros_like(en_ref)

        arow = arow_ref[...]                       # [TR, Dp] (L2-normalized)
        labr = labr_ref[...]                       # [TR, 1]

        def _anchor_step():
            acol = acol_ref[...]                   # [TC, Dp]
            # [TR, TC] = arow @ acol^T on the MXU (contract dim 1 of both).
            adc = jax.lax.dot_general(
                arow, acol, (((1,), (1,)), ((), ())),
                preferred_element_type=jnp.float32) * inv_t
            # In-kernel masks: class equality and off-diagonal (logits_mask).
            row_ids = r * tr + jax.lax.broadcasted_iota(jnp.int32, (tr, tc), 0)
            col_ids = c * tc + jax.lax.broadcasted_iota(jnp.int32, (tr, tc), 1)
            off_diag = row_ids != col_ids
            posf = jnp.logical_and(labr == labc_ref[...], off_diag)
            posf = posf.astype(jnp.float32)
            # Online (flash-style) softmax accumulation over column blocks.
            m_old = m_ref[...]
            m_new = jnp.maximum(m_old, jnp.max(adc, axis=1, keepdims=True))
            alpha = jnp.exp(m_old - m_new)
            p = jnp.exp(adc - m_new) * off_diag.astype(jnp.float32)
            e_ref[...] = e_ref[...] * alpha + jnp.sum(p, axis=1, keepdims=True)
            num_ref[...] += jnp.sum(posf * adc, axis=1, keepdims=True)
            cnt_ref[...] += jnp.sum(posf, axis=1, keepdims=True)
            m_ref[...] = m_new

        if has_neg:
            pl.when(c < c_anchor)(_anchor_step)

            @pl.when(c >= c_anchor)
            def _neg_step():
                nb = neg_ref[...]                  # [TCN, Dp]
                nadc = jax.lax.dot_general(
                    arow, nb, (((1,), (1,)), ((), ())),
                    preferred_element_type=jnp.float32) * inv_t
                p = jnp.exp(nadc - m_ref[...])     # row max is final here
                if labeled_neg:
                    p = p * (labr == labc_ref[...]).astype(jnp.float32)
                en_ref[...] += jnp.sum(p, axis=1, keepdims=True)
        else:
            _anchor_step()

        @pl.when(c == c_total - 1)
        def _finalize():
            lmax = m_ref[...]
            num = num_ref[...] / cnt_ref[...] - lmax
            e = e_ref[...]
            if has_neg:
                en = en_ref[...]
                if vos_mode in ("Cont", "ContOne"):
                    lp = num - jnp.log(e + lamb * en)
                elif vos_mode == "DualCont":
                    lp = num + jnp.log(1.0 / e + lamb / en)
                elif vos_mode == "DualOut":
                    lp = ((1.0 + lamb) * num
                          - (jnp.log(e) + lamb * jnp.log(en)))
                else:
                    raise ValueError(f"Unknown vos_mode: {vos_mode}")
            else:
                lp = num - jnp.log(e)
            out_ref[...] = scale * lp

    return kernel


def vocon_loss(features, labels=None, negative_features=None, *,
               temperature=0.07, base_temperature=0.07, lamb=1.0,
               vos_mode="Cont"):
    if features.ndim < 3:
        raise ValueError("`features` needs to be [bsz, n_views, ...], "
                         "at least 3 dimensions are required")
    f = features.astype(jnp.float32)
    # F.normalize(features, dim=-1) over the *original* trailing dim (eps=1e-12).
    f = f / jnp.maximum(jnp.linalg.norm(f, axis=-1, keepdims=True), 1e-12)
    if f.ndim > 3:
        f = f.reshape(f.shape[0], f.shape[1], -1)
    B, V, D = f.shape
    N = B * V

    # torch.cat(torch.unbind(features, dim=1), dim=0) -> view-major [N, D]
    anchors = jnp.transpose(f, (1, 0, 2)).reshape(N, D)

    # Label vector matching the view-major row order.  labels=None uses
    # pseudo-labels arange(B), which reproduces eye(B) tiled (V, V).
    if labels is None:
        lab = jnp.arange(B, dtype=jnp.float32)
    else:
        lab = jnp.asarray(labels).reshape(-1).astype(jnp.float32)
        if lab.shape[0] != B:
            raise ValueError("Num of labels does not match num of features")
    labv = jnp.tile(lab, V)
    lab_r = labv.reshape(N, 1)
    lab_c = labv.reshape(1, N)

    # Zero-pad the feature dim to a multiple of 128 (MXU depth / lane dim).
    Dp = ((D + 127) // 128) * 128
    if Dp != D:
        anchors = jnp.pad(anchors, ((0, 0), (0, Dp - D)))

    has_neg = negative_features is not None
    labeled_neg = has_neg and labels is not None
    nf = None
    M = 0
    if has_neg:
        nf = negative_features.astype(jnp.float32)
        if nf.ndim != 2 or nf.shape[1] != D:
            raise ValueError("`negative_features` must be [M, dim] with the "
                             "same feature dim as `features`")
        M = nf.shape[0]
        if labeled_neg and M != N:
            raise ValueError("labeled negative path requires M == bsz*n_views")
        nf = nf / jnp.maximum(jnp.linalg.norm(nf, axis=-1, keepdims=True), 1e-12)
        if Dp != D:
            nf = jnp.pad(nf, ((0, 0), (0, Dp - D)))

    # Tile sizes: row tile (sublane axis, mult of 8) / column tiles (lane axis,
    # mult of 128), sized so double-buffered blocks stay small even for big D
    # (keeps the working set well under v7x's 64 MiB VMEM).
    row_bytes = Dp * 4
    tr_target = max(8, min(256, ((1 << 20) // row_bytes) // 8 * 8))
    tc_target = max(128, min(512, ((1 << 21) // row_bytes) // 128 * 128))
    TR = _pick_tile(N, tr_target, 8)
    TC = _pick_tile(N, tc_target, 128)
    R = N // TR
    C_a = N // TC
    if has_neg:
        TCN = TC if labeled_neg else _pick_tile(M, tc_target, 128)
        C_n = M // TCN
    else:
        TCN = 0
        C_n = 0
    C_total = C_a + C_n

    inv_t = 1.0 / float(temperature)
    scale = -(float(temperature) / float(base_temperature))
    kernel = _make_kernel(inv_t, scale, lamb, vos_mode, has_neg, labeled_neg,
                          TR, TC, C_a, C_total)

    row_spec = pl.BlockSpec((TR, Dp), lambda r, c: (r, 0))
    col_spec = pl.BlockSpec((TC, Dp), lambda r, c: (jnp.minimum(c, C_a - 1), 0))
    labr_spec = pl.BlockSpec((TR, 1), lambda r, c: (r, 0))
    if labeled_neg:
        # During neg steps the label columns are the same as anchor columns
        # (M == N, same tile), so c % C_a addresses both phases.
        labc_spec = pl.BlockSpec((1, TC), lambda r, c: (0, c % C_a))
    else:
        labc_spec = pl.BlockSpec((1, TC),
                                 lambda r, c: (0, jnp.minimum(c, C_a - 1)))

    if has_neg:
        neg_spec = pl.BlockSpec((TCN, Dp),
                                lambda r, c: (jnp.maximum(c - C_a, 0), 0))
        in_specs = [row_spec, col_spec, labr_spec, labc_spec, neg_spec]
        args = (anchors, anchors, lab_r, lab_c, nf)
        n_scratch = 5
    else:
        in_specs = [row_spec, col_spec, labr_spec, labc_spec]
        args = (anchors, anchors, lab_r, lab_c)
        n_scratch = 4

    per_row_loss = pl.pallas_call(
        kernel,
        out_shape=jax.ShapeDtypeStruct((N, 1), jnp.float32),
        grid=(R, C_total),
        in_specs=in_specs,
        out_specs=pl.BlockSpec((TR, 1), lambda r, c: (r, 0)),
        scratch_shapes=[pltpu.VMEM((TR, 1), jnp.float32)] * n_scratch,
        compiler_params=pltpu.CompilerParams(
            dimension_semantics=("parallel", "arbitrary")),
    )(*args)

    # loss.view(anchor_count, batch_size).mean() == mean over all N rows.
    return jnp.mean(per_row_loss)


def vocon_loss_ref(features, labels=None, negative_features=None, *,
                   temperature=0.07, base_temperature=0.07, lamb=1.0,
                   vos_mode="Cont"):
    """Pure-JAX reference mirroring the PyTorch forward."""
    f = features / jnp.maximum(
        jnp.linalg.norm(features, axis=-1, keepdims=True), 1e-12)
    B, V, D = f.shape
    N = B * V
    cf = jnp.concatenate([f[:, v, :] for v in range(V)], axis=0)
    if labels is None:
        cm = jnp.eye(B, dtype=jnp.float32)
    else:
        lb = labels.reshape(-1, 1)
        cm = (lb == lb.T).astype(jnp.float32)
    cm = jnp.tile(cm, (V, V))
    lm = 1.0 - jnp.eye(N, dtype=jnp.float32)
    mask = cm * lm
    adc = (cf @ cf.T) / temperature
    lmax = jnp.max(adc, axis=1, keepdims=True)
    logits = adc - lmax
    log_prob = jnp.sum(mask * logits, axis=1) / jnp.sum(mask, axis=1)
    exp_logits = jnp.sum(jnp.exp(logits) * lm, axis=1)
    if negative_features is not None:
        nf = negative_features / jnp.maximum(
            jnp.linalg.norm(negative_features, axis=-1, keepdims=True), 1e-12)
        nl = (cf @ nf.T) / temperature - lmax
        if labels is None:
            nexp = jnp.sum(jnp.exp(nl), axis=1)
        else:
            nexp = jnp.sum(jnp.exp(nl) * cm, axis=1)
        if vos_mode in ("Cont", "ContOne"):
            log_prob = log_prob - jnp.log(exp_logits + lamb * nexp)
        elif vos_mode == "DualCont":
            log_prob = log_prob + jnp.log(1.0 / exp_logits + lamb / nexp)
        elif vos_mode == "DualOut":
            log_prob = ((1.0 + lamb) * log_prob
                        - (jnp.log(exp_logits) + lamb * jnp.log(nexp)))
    else:
        log_prob = log_prob - jnp.log(exp_logits)
    loss = -(temperature / base_temperature) * log_prob
    return jnp.mean(loss)


if __name__ == "__main__":
    key = jax.random.PRNGKey(0)
    k1, k2, k3 = jax.random.split(key, 3)
    B, V, D = 8, 2, 32
    features = jax.random.normal(k1, (B, V, D), jnp.float32)
    labels = jax.random.randint(k2, (B,), 0, 3)
    negatives = jax.random.normal(k3, (B * V, D), jnp.float32)

    cases = [
        dict(labels=None, negative_features=None),                 # SimCLR
        dict(labels=labels, negative_features=None),               # SupCon
        dict(labels=None, negative_features=negatives),            # VOS unlabeled
        dict(labels=labels, negative_features=negatives),          # VOS 'Cont'
        dict(labels=labels, negative_features=negatives, vos_mode="DualCont"),
        dict(labels=labels, negative_features=negatives, vos_mode="DualOut"),
    ]
    for i, kw in enumerate(cases):
        out = jax.block_until_ready(vocon_loss(features, **kw))
        ref = vocon_loss_ref(features, **kw)
        assert jnp.allclose(out, ref, atol=1e-4, rtol=1e-4), (i, out, ref)
    print("KERNEL_OK")
</pallas_src>

<mosaic_0001>
module attributes {stable_mosaic.version = 11 : i64} {
  func.func @kernel(%arg0: i32, %arg1: i32, %arg2: memref<16x128xf32, #tpu.memory_space<vmem>>, %arg3: memref<16x128xf32, #tpu.memory_space<vmem>>, %arg4: memref<16x1xf32, #tpu.memory_space<vmem>>, %arg5: memref<1x16xf32, #tpu.memory_space<vmem>>, %arg6: memref<16x1xf32, #tpu.memory_space<vmem>>, %arg7: memref<16x1xf32, #tpu.memory_space<vmem>>, %arg8: memref<16x1xf32, #tpu.memory_space<vmem>>, %arg9: memref<16x1xf32, #tpu.memory_space<vmem>>, %arg10: memref<16x1xf32, #tpu.memory_space<vmem>>) attributes {dimension_semantics = [#tpu.dimension_semantics<parallel>, #tpu.dimension_semantics<arbitrary>], iteration_bounds = array<i64: 1, 1>, scalar_prefetch = 0 : i64, scratch_operands = 4 : i64, tpu.core_type = #tpu.core_type<tc>, window_params = [{transform_indices = @transform_0, window_bounds = array<i64: 16, 128>}, {transform_indices = @transform_1, window_bounds = array<i64: 16, 128>}, {transform_indices = @transform_2, window_bounds = array<i64: 16, 1>}, {transform_indices = @transform_3, window_bounds = array<i64: 1, 16>}, {transform_indices = @transform_4, window_bounds = array<i64: 16, 1>}]} {
    %c0_i32 = arith.constant 0 : i32
    %0 = arith.cmpi eq, %arg1, %c0_i32 : i32
    %1 = arith.extui %0 : i1 to i32
    %c0_i32_0 = arith.constant 0 : i32
    %2 = arith.cmpi ne, %1, %c0_i32_0 : i32
    scf.if %2 {
      %cst_32 = arith.constant -1.000000e+30 : f32
      %58 = vector.broadcast %cst_32 : f32 to vector<16x1xf32>
      %c0_33 = arith.constant 0 : index
      %c0_34 = arith.constant 0 : index
      %59 = vector.load %arg7[%c0_33, %c0_34] : memref<16x1xf32, #tpu.memory_space<vmem>>, vector<16x1xf32>
      tpu.vector_store %arg7[%c0_33, %c0_34], %58 {strides = array<i32>} : memref<16x1xf32, #tpu.memory_space<vmem>>, vector<16x1xf32>,
      %cst_35 = arith.constant 0.000000e+00 : f32
      %60 = vector.broadcast %cst_35 : f32 to vector<16x1xf32>
      %c0_36 = arith.constant 0 : index
      %c0_37 = arith.constant 0 : index
      %61 = vector.load %arg8[%c0_36, %c0_37] : memref<16x1xf32, #tpu.memory_space<vmem>>, vector<16x1xf32>
      tpu.vector_store %arg8[%c0_36, %c0_37], %60 {strides = array<i32>} : memref<16x1xf32, #tpu.memory_space<vmem>>, vector<16x1xf32>,
      %cst_38 = arith.constant 0.000000e+00 : f32
      %62 = vector.broadcast %cst_38 : f32 to vector<16x1xf32>
      %c0_39 = arith.constant 0 : index
      %c0_40 = arith.constant 0 : index
      %63 = vector.load %arg9[%c0_39, %c0_40] : memref<16x1xf32, #tpu.memory_space<vmem>>, vector<16x1xf32>
      tpu.vector_store %arg9[%c0_39, %c0_40], %62 {strides = array<i32>} : memref<16x1xf32, #tpu.memory_space<vmem>>, vector<16x1xf32>,
      %cst_41 = arith.constant 0.000000e+00 : f32
      %64 = vector.broadcast %cst_41 : f32 to vector<16x1xf32>
      %c0_42 = arith.constant 0 : index
      %c0_43 = arith.constant 0 : index
      %65 = vector.load %arg10[%c0_42, %c0_43] : memref<16x1xf32, #tpu.memory_space<vmem>>, vector<16x1xf32>
      tpu.vector_store %arg10[%c0_42, %c0_43], %64 {strides = array<i32>} : memref<16x1xf32, #tpu.memory_space<vmem>>, vector<16x1xf32>,
    } else {
    }
    %c0 = arith.constant 0 : index
    %c0_1 = arith.constant 0 : index
    %3 = vector.load %arg2[%c0, %c0_1] : memref<16x128xf32, #tpu.memory_space<vmem>>, vector<16x128xf32>
    %c0_2 = arith.constant 0 : index
    %c0_3 = arith.constant 0 : index
    %4 = vector.load %arg4[%c0_2, %c0_3] : memref<16x1xf32, #tpu.memory_space<vmem>>, vector<16x1xf32>
    %c0_4 = arith.constant 0 : index
    %c0_5 = arith.constant 0 : index
    %5 = vector.load %arg3[%c0_4, %c0_5] : memref<16x128xf32, #tpu.memory_space<vmem>>, vector<16x128xf32>
    %cst = arith.constant dense<0.000000e+00> : vector<16x16xf32>
    %6 = tpu.matmul %3, %5, %cst {dimension_numbers = #tpu.dot_dimension_numbers<[1], [1], [0], [0], [0, 0, 1, 0], [], []>} : vector<16x128xf32>, vector<16x128xf32>, vector<16x16xf32> -> vector<16x16xf32>
    %cst_6 = arith.constant 14.2857141 : f32
    %7 = vector.broadcast %cst_6 : f32 to vector<16x16xf32>
    %8 = arith.mulf %6, %7 : vector<16x16xf32>
    %c16_i32 = arith.constant 16 : i32
    %9 = arith.muli %arg0, %c16_i32 : i32
    %10 = tpu.iota {dimensions = array<i32: 0>} : vector<16x16xi32>
    %11 = vector.broadcast %9 : i32 to vector<16x16xi32>
    %12 = arith.addi %11, %10 : vector<16x16xi32>
    %c16_i32_7 = arith.constant 16 : i32
    %13 = arith.muli %arg1, %c16_i32_7 : i32
    %14 = tpu.iota {dimensions = array<i32: 1>} : vector<16x16xi32>
    %15 = vector.broadcast %13 : i32 to vector<16x16xi32>
    %16 = arith.addi %15, %14 : vector<16x16xi32>
    %17 = arith.cmpi ne, %12, %16 : vector<16x16xi32>
    %c0_8 = arith.constant 0 : index
    %c0_9 = arith.constant 0 : index
    %18 = vector.load %arg5[%c0_8, %c0_9] : memref<1x16xf32, #tpu.memory_space<vmem>>, vector<1x16xf32>
    %19 = vector.broadcast %4 : vector<16x1xf32> to vector<16x16xf32>
    %20 = vector.broadcast %18 : vector<1x16xf32> to vector<16x16xf32>
    %21 = arith.cmpf oeq, %19, %20 : vector<16x16xf32>
    %22 = arith.andi %21, %17 : vector<16x16xi1>
    %23 = arith.extui %22 : vector<16x16xi1> to vector<16x16xi32>
    %24 = arith.sitofp %23 : vector<16x16xi32> to vector<16x16xf32>
    %c0_10 = arith.constant 0 : index
    %c0_11 = arith.constant 0 : index
    %25 = vector.load %arg7[%c0_10, %c0_11] : memref<16x1xf32, #tpu.memory_space<vmem>>, vector<16x1xf32>
    %cst_12 = arith.constant dense<0xFF800000> : vector<16xf32>
    %26 = vector.multi_reduction <maximumf>, %8, %cst_12 [1] : vector<16x16xf32> to vector<16xf32>
    %27 = vector.shape_cast %26 : vector<16xf32> to vector<16x1xf32>
    %28 = arith.maximumf %25, %27 : vector<16x1xf32>
    %29 = arith.subf %25, %28 : vector<16x1xf32>
    %30 = math.exp %29 : vector<16x1xf32>
    %31 = vector.broadcast %28 : vector<16x1xf32> to vector<16x16xf32>
    %32 = arith.subf %8, %31 : vector<16x16xf32>
    %33 = math.exp %32 : vector<16x16xf32>
    %34 = arith.extui %17 : vector<16x16xi1> to vector<16x16xi32>
    %35 = arith.sitofp %34 : vector<16x16xi32> to vector<16x16xf32>
    %36 = arith.mulf %33, %35 : vector<16x16xf32>
    %c0_13 = arith.constant 0 : index
    %c0_14 = arith.constant 0 : index
    %37 = vector.load %arg8[%c0_13, %c0_14] : memref<16x1xf32, #tpu.memory_space<vmem>>, vector<16x1xf32>
    %38 = arith.mulf %37, %30 : vector<16x1xf32>
    %cst_15 = arith.constant dense<0.000000e+00> : vector<16xf32>
    %39 = vector.multi_reduction <add>, %36, %cst_15 [1] : vector<16x16xf32> to vector<16xf32>
    %40 = vector.shape_cast %39 : vector<16xf32> to vector<16x1xf32>
    %41 = arith.addf %38, %40 : vector<16x1xf32>
    %c0_16 = arith.constant 0 : index
    %c0_17 = arith.constant 0 : index
    %42 = vector.load %arg8[%c0_16, %c0_17] : memref<16x1xf32, #tpu.memory_space<vmem>>, vector<16x1xf32>
    tpu.vector_store %arg8[%c0_16, %c0_17], %41 {strides = array<i32>} : memref<16x1xf32, #tpu.memory_space<vmem>>, vector<16x1xf32>,
    %c0_18 = arith.constant 0 : index
    %c0_19 = arith.constant 0 : index
    %43 = vector.load %arg9[%c0_18, %c0_19] : memref<16x1xf32, #tpu.memory_space<vmem>>, vector<16x1xf32>
    %44 = arith.mulf %24, %8 : vector<16x16xf32>
    %cst_20 = arith.constant dense<0.000000e+00> : vector<16xf32>
    %45 = vector.multi_reduction <add>, %44, %cst_20 [1] : vector<16x16xf32> to vector<16xf32>
    %46 = vector.shape_cast %45 : vector<16xf32> to vector<16x1xf32>
    %47 = arith.addf %43, %46 : vector<16x1xf32>
    %c0_21 = arith.constant 0 : index
    %c0_22 = arith.constant 0 : index
    %48 = vector.load %arg9[%c0_21, %c0_22] : memref<16x1xf32, #tpu.memory_space<vmem>>, vector<16x1xf32>
    tpu.vector_store %arg9[%c0_21, %c0_22], %47 {strides = array<i32>} : memref<16x1xf32, #tpu.memory_space<vmem>>, vector<16x1xf32>,
    %c0_23 = arith.constant 0 : index
    %c0_24 = arith.constant 0 : index
    %49 = vector.load %arg10[%c0_23, %c0_24] : memref<16x1xf32, #tpu.memory_space<vmem>>, vector<16x1xf32>
    %cst_25 = arith.constant dense<0.000000e+00> : vector<16xf32>
    %50 = vector.multi_reduction <add>, %24, %cst_25 [1] : vector<16x16xf32> to vector<16xf32>
    %51 = vector.shape_cast %50 : vector<16xf32> to vector<16x1xf32>
    %52 = arith.addf %49, %51 : vector<16x1xf32>
    %c0_26 = arith.constant 0 : index
    %c0_27 = arith.constant 0 : index
    %53 = vector.load %arg10[%c0_26, %c0_27] : memref<16x1xf32, #tpu.memory_space<vmem>>, vector<16x1xf32>
    tpu.vector_store %arg10[%c0_26, %c0_27], %52 {strides = array<i32>} : memref<16x1xf32, #tpu.memory_space<vmem>>, vector<16x1xf32>,
    %c0_28 = arith.constant 0 : index
    %c0_29 = arith.constant 0 : index
    %54 = vector.load %arg7[%c0_28, %c0_29] : memref<16x1xf32, #tpu.memory_space<vmem>>, vector<16x1xf32>
    tpu.vector_store %arg7[%c0_28, %c0_29], %28 {strides = array<i32>} : memref<16x1xf32, #tpu.memory_space<vmem>>, vector<16x1xf32>,
    %c0_i32_30 = arith.constant 0 : i32
    %55 = arith.cmpi eq, %arg1, %c0_i32_30 : i32
    %56 = arith.extui %55 : i1 to i32
    %c0_i32_31 = arith.constant 0 : i32
    %57 = arith.cmpi ne, %56, %c0_i32_31 : i32
    scf.if %57 {
      %c0_32 = arith.constant 0 : index
      %c0_33 = arith.constant 0 : index
      %58 = vector.load %arg7[%c0_32, %c0_33] : memref<16x1xf32, #tpu.memory_space<vmem>>, vector<16x1xf32>
      %c0_34 = arith.constant 0 : index
      %c0_35 = arith.constant 0 : index
      %59 = vector.load %arg9[%c0_34, %c0_35] : memref<16x1xf32, #tpu.memory_space<vmem>>, vector<16x1xf32>
      %c0_36 = arith.constant 0 : index
      %c0_37 = arith.constant 0 : index
      %60 = vector.load %arg10[%c0_36, %c0_37] : memref<16x1xf32, #tpu.memory_space<vmem>>, vector<16x1xf32>
      %61 = arith.divf %59, %60 : vector<16x1xf32>
      %62 = arith.subf %61, %58 : vector<16x1xf32>
      %c0_38 = arith.constant 0 : index
      %c0_39 = arith.constant 0 : index
      %63 = vector.load %arg8[%c0_38, %c0_39] : memref<16x1xf32, #tpu.memory_space<vmem>>, vector<16x1xf32>
      %64 = math.log %63 : vector<16x1xf32>
      %65 = arith.subf %62, %64 : vector<16x1xf32>
      %cst_40 = arith.constant -1.000000e+00 : f32
      %66 = vector.broadcast %cst_40 : f32 to vector<16x1xf32>
      %67 = arith.mulf %66, %65 : vector<16x1xf32>
      %c0_41 = arith.constant 0 : index
      %c0_42 = arith.constant 0 : index
      %68 = vector.load %arg6[%c0_41, %c0_42] : memref<16x1xf32, #tpu.memory_space<vmem>>, vector<16x1xf32>
      tpu.vector_store %arg6[%c0_41, %c0_42], %67 {strides = array<i32>} : memref<16x1xf32, #tpu.memory_space<vmem>>, vector<16x1xf32>,
    } else {
    }
    return
  }
  func.func @transform_0(%arg0: i32, %arg1: i32) -> (i32, i32) {
    %c0_i32 = arith.constant 0 : i32
    %c0_i32_0 = arith.constant 0 : i32
    return %arg0, %c0_i32 : i32, i32
  }
  func.func @transform_1(%arg0: i32, %arg1: i32) -> (i32, i32) {
    %c0_i32 = arith.constant 0 : i32
    %0 = arith.minsi %arg1, %c0_i32 : i32
    %c0_i32_0 = arith.constant 0 : i32
    %c0_i32_1 = arith.constant 0 : i32
    return %0, %c0_i32_0 : i32, i32
  }
  func.func @transform_2(%arg0: i32, %arg1: i32) -> (i32, i32) {
    %c0_i32 = arith.constant 0 : i32
    %c0_i32_0 = arith.constant 0 : i32
    return %arg0, %c0_i32 : i32, i32
  }
  func.func @transform_3(%arg0: i32, %arg1: i32) -> (i32, i32) {
    %c0_i32 = arith.constant 0 : i32
    %0 = arith.minsi %arg1, %c0_i32 : i32
    %c0_i32_0 = arith.constant 0 : i32
    %c0_i32_1 = arith.constant 0 : i32
    return %c0_i32_0, %0 : i32, i32
  }
  func.func @transform_4(%arg0: i32, %arg1: i32) -> (i32, i32) {
    %c0_i32 = arith.constant 0 : i32
    %c0_i32_0 = arith.constant 0 : i32
    return %arg0, %c0_i32 : i32, i32
  }
}

</mosaic_0001>

<bundles_post_ra>
// kernel: tpu_custom_call.1
= control target key start
LH: loop header
LB: loop body
LE: loop exit
PB: predicated region body
PF: predicated region fallthrough
CT: control target
= control target key end

     0   :  { %9 = vsyncpa [#allocation7], 0  ;;  %s348_s15 = smov [#allocation6]   ;;  %s450_s0 = inlined_call_operand.vmem [shape: f32[16,128], index: 0, kind: input, shape index: {}]   ;;  %s451_s1 = inlined_call_operand.hbm [shape: f32[16,128], index: 1, kind: input, shape index: {}]   ;;  %s452_s2 = inlined_call_operand.vmem [shape: f32[16,1], index: 2, kind: input, shape index: {}]   ;;  %s453_s3 = inlined_call_operand.vmem [shape: f32[1,16], index: 3, kind: input, shape index: {}]   ;;  %s454_s4 = inlined_call_operand.vmem [shape: f32[16,1], index: 4, kind: output, shape index: {}]  }
   0x1   :  { %s17_s16 = sshll.u32 %s348_s15, 4  ;;  %s324_s19 = scalar_lea.hbm %s451_s1, 256  ;;  %s18_s16 = int_to_ptr.vmem [resolvable:$true] %s17_s16 }
   0x2   :  { %p325_p0 = scmp.ne.s32.totalorder %s451_s1, %s324_s19  ;;  %p328_p1 = scmp.lt.u32.totalorder %s324_s19, %s451_s1 }
   0x4   :  { %p330_p2 = pnand %p328_p1, %p325_p0 }
   0x6   :  { %333 = shalt.err (!%p330_p2)
}
   0x7   :  { %s334_s24 = scalar_lea.vmem %s18_s16, 256  ;;  %p339_p4 = scmp.lt.s32.totalorder %s18_s16, %s18_s16 }
   0x8   :  { %p335_p3 = scmp.ne.s32.totalorder %s18_s16, %s334_s24  ;;  %p340_p5 = scmp.lt.s32.totalorder %s334_s24, %s334_s24 }
   0xa   :  { %p341_p6 = por %p340_p5, %p339_p4 }
   0xc   :  { %p342_p7 = pnand %p341_p6, %p335_p3 }
   0xe   :  { %345 = shalt.err (!%p342_p7)
}
   0xf   :  { %s349_s25 = smov 128   ;;  %s350_s26 = smov 8  }
  0x10   :  { %23 = dma.hbm_to_vmem [thread:$0]  %s451_s1, 256, %s18_s16, [#allocation7], %s349_s25, %s349_s25, %s350_s26  }
  0x11   :  { %346 = dma.done.wait [#allocation7], 256  }
  0x12   :  { %347 = vsyncadd [#allocation7], 4294967040  ;;  %v48_v0 = vld [vmem:[#allocation6] sm:$0xff]  ;;  %v49_v1 = vld [vmem:[#allocation6 + $0x8] sm:$0xff]  ;;  %v351_v5 = vmov 0   ;;  %vm35_vm0 = vcmask 7168   ;;  %v128_v24 = vlaneseq }
  0x13   :  { %v44_v2 = vld [vmem:[%s450_s0] sm:$0xff]  ;;  %v296_v3 = vpack.c.bf16 %v49_v1, %v48_v0  ;;  %v45_v4 = vld [vmem:[%s450_s0 + $0x8] sm:$0xff]  ;;  %307 = vset.pattern.permute.xlu0 %v351_v5  ;;  %306 = vset.pattern.permute.xlu1 %v351_v5  ;;  %v352_v6 = vmov -1e+30   ;;  %vm168_vm1 = vcmask 130048   ;;  %v353_v14 = vmov 0.0  }
  0x14   :  { %293 = vmatprep.mubr.f32.mxu0 %v44_v2  ;;  %36 = vst.msk [vmem:[#allocation2] sm:$0xff] %vm35_vm0, %v352_v6  ;;  %37 = vst.msk [vmem:[#allocation2 + $0x8] sm:$0xff] %vm35_vm0, %v352_v6  ;;  %v46_v13 = vld [vmem:[%s452_s2] sm:$0xff]  ;;  %v47_v23 = vld [vmem:[%s452_s2 + $0x8] sm:$0xff]  ;;  %v129_v25 = vshrl.u32 %v128_v24, 7  ;;  %v136_v26 = vand.u32 127, %v128_v24 }
  0x15   :  { %297 = vmatprep.subr.bf16.mxu0 %v296_v3  ;;  %38 = vst.msk [vmem:[#allocation3] sm:$0xff] %vm35_vm0, %v353_v14  ;;  %39 = vst.msk [vmem:[#allocation3 + $0x8] sm:$0xff] %vm35_vm0, %v353_v14  ;;  %v280_v27 = vld [vmem:[%s453_s3] ss:$0 sm:$0xff] }
  0x16   :  { %299 = vmatpush3.bf16.xpose.msra.mxu0 %v296_v3  ;;  %40 = vst.msk [vmem:[#allocation4] sm:$0xff] %vm35_vm0, %v353_v14  ;;  %41 = vst.msk [vmem:[#allocation4 + $0x8] sm:$0xff] %vm35_vm0, %v353_v14  ;;  %vm139_vm2 = vcmp.ne.s32.totalorder %v129_v25, %v136_v26  ;;  %v130_v34 = vadd.s32 8, %v129_v25 }
  0x17   :  { %42 = vst.msk [vmem:[#allocation5] sm:$0xff] %vm35_vm0, %v353_v14  ;;  %43 = vst.msk [vmem:[#allocation5 + $0x8] sm:$0xff] %vm35_vm0, %v353_v14  ;;  %v283_v41 = vsel %vm139_vm2, 1.0, %v353_v14 }
  0x18   :  { %vm140_vm5 = vcmp.ne.s32.totalorder %v130_v34, %v136_v26 }
  0x19   :  { %v284_v44 = vsel %vm140_vm5, 1.0, %v353_v14 }
  0x1b   :  { %v166_v15 = vld [vmem:[#allocation2] sm:$0xff]  ;;  %v167_v18 = vld [vmem:[#allocation2 + $0x8] sm:$0xff] }
  0x1c   :  { %v205_v62 = vld [vmem:[#allocation3] sm:$0xff]  ;;  %v206_v2 = vld [vmem:[#allocation3 + $0x8] sm:$0xff] }
  0x1d   :  { %294 = vmatmul.mubr.f32.vlgmr.msra.gmra.mrb[0].mxu0 %v45_v4 }
  0x1e   :  { %v234_v53 = vld [vmem:[#allocation5] sm:$0xff]  ;;  %v235_v58 = vld [vmem:[#allocation5 + $0x8] sm:$0xff] }
  0xf0   :  { %v295_v7 = vpop.f32.mrb[0].mxu0 }
  0xf1   :  { %v116_v8 = vpop.f32.mrb[1].mxu0  ;;  %v401_v10 = vmul.f32 14.285714, %v295_v7 }
  0xf2   :  { %v399_v9 = vmul.f32 14.285714, %v116_v8  ;;  %v220_v8 = vld [vmem:[#allocation4] sm:$0xff] }
  0xf3   :  { %v172_v12 = vsel %vm168_vm1, %v401_v10, -inf }
  0xf4   :  { %v169_v11 = vsel %vm168_vm1, %v399_v9, -inf }
  0xf5   :  { %170 = vmax.xlane.f32.xlu0 %v169_v11 }
  0xf9   :  { %173 = vmax.xlane.f32.xlu0 %v172_v12 }
 0x10f   :  { %144 = vperm.xlu0 %307, %v46_v13   ;;  %v221_v13 = vld [vmem:[#allocation4 + $0x8] sm:$0xff] }
 0x182   :  { %v171_v16 = vpop.xlane.xlu0 %170 }
 0x183   :  { %v175_v17 = vmax.f32 %v166_v15, %v171_v16 }
 0x185   :  { %v177_v19 = vsub.f32 %v166_v15, %v175_v17  ;;  %246 = vst.msk [vmem:[#allocation2] sm:$0xff] %vm35_vm0, %v175_v17  ;;  %185 = vperm.xlu1 %306, %v175_v17  }
 0x186   :  { %v174_v20 = vpop.xlane.xlu0 %173 }
 0x187   :  { %v176_v21 = vmax.f32 %v167_v18, %v174_v20  ;;  %v179_v56 = vmul.f32 1.442695, %v177_v19 }
 0x189   :  { %v178_v22 = vsub.f32 %v167_v18, %v176_v21  ;;  %247 = vst.msk [vmem:[#allocation2 + $0x8] sm:$0xff] %vm35_vm0, %v176_v21  ;;  %190 = vperm.xlu1 %306, %v176_v21  }
 0x18b   :  { %v181_v57 = vmul.f32 1.442695, %v178_v22 }
 0x18c   :  { %v251_v20 = vld [vmem:[#allocation2] sm:$0xff] }
 0x18d   :  { %149 = vperm.xlu1 %306, %v47_v23  }
 0x18e   :  { %v145_v28 = vpop.permute.xlu0 %144 }
 0x18f   :  { %vm158_vm3 = vcmp.eq.f32.partialorder %v145_v28, %v280_v27 }
 0x190   :  { %vm160_vm4 = vmand %vm158_vm3, %vm139_vm2 }
 0x191   :  { %v281_v29 = vsel %vm160_vm4, 1.0, %v353_v14 }
 0x192   :  { %v236_v30 = vsel %vm168_vm1, %v281_v29, 0.0  ;;  %v222_v49 = vmul.f32 %v281_v29, %v399_v9 }
 0x194   :  { %v224_v50 = vsel %vm168_vm1, %v222_v49, 0.0 }
 0x1b1   :  { %237 = vadd.xlane.f32.xlu1 %v236_v30 }
 0x204   :  { %v186_v31 = vpop.permute.xlu1 %185 }
 0x205   :  { %v193_v32 = vsub.f32 %v399_v9, %v186_v31 }
 0x207   :  { %v195_v33 = vmul.f32 1.442695, %v193_v32 }
 0x208   :  { %v191_v35 = vpop.permute.xlu1 %190 }
 0x209   :  { %308 = vpow2.f32 %v195_v33  ;;  %v194_v36 = vsub.f32 %v401_v10, %v191_v35 }
 0x20b   :  { %v197_v37 = vmul.f32 1.442695, %v194_v36 }
 0x20c   :  { %v150_v38 = vpop.permute.xlu1 %149 }
 0x20d   :  { %310 = vpow2.f32 %v197_v37  ;;  %vm159_vm6 = vcmp.eq.f32.partialorder %v150_v38, %v280_v27  ;;  %v252_v27 = vld [vmem:[#allocation2 + $0x8] sm:$0xff] }
 0x20e   :  { %vm161_vm7 = vmand %vm159_vm6, %vm140_vm5  ;;  %312 = vpow2.f32 %v179_v56 }
 0x20f   :  { %v282_v39 = vsel %vm161_vm7, 1.0, %v353_v14  ;;  %314 = vpow2.f32 %v181_v57 }
 0x210   :  { %v239_v40 = vsel %vm168_vm1, %v282_v39, 0.0  ;;  %v223_v51 = vmul.f32 %v282_v39, %v401_v10 }
 0x211   :  { %240 = vadd.xlane.f32.xlu1 %v239_v40 }
 0x212   :  { %v227_v52 = vsel %vm168_vm1, %v223_v51, 0.0 }
 0x213   :  { %v309_v42 = vpop.eup %308 }
 0x214   :  { %v203_v43 = vmul.f32 %v309_v42, %v283_v41 }
 0x216   :  { %v209_v45 = vsel %vm168_vm1, %v203_v43, 0.0 }
 0x217   :  { %v311_v46 = vpop.eup %310  ;;  %210 = vadd.xlane.f32.xlu0 %v209_v45 }
 0x218   :  { %v204_v47 = vmul.f32 %v311_v46, %v284_v44  ;;  %v313_v61 = vpop.eup %312 }
 0x219   :  { %v207_v63 = vmul.f32 %v313_v61, %v205_v62  ;;  %v315_v0 = vpop.eup %314 }
 0x21a   :  { %v212_v48 = vsel %vm168_vm1, %v204_v47, 0.0  ;;  %v208_v5 = vmul.f32 %v315_v0, %v206_v2 }
 0x21b   :  { %213 = vadd.xlane.f32.xlu1 %v212_v48 }
 0x21f   :  { %225 = vadd.xlane.f32.xlu1 %v224_v50 }
 0x223   :  { %228 = vadd.xlane.f32.xlu1 %v227_v52 }
 0x23e   :  { %v238_v54 = vpop.xlane.xlu1 %237 }
 0x23f   :  { %v242_v55 = vadd.f32 %v238_v54, %v234_v53 }
 0x241   :  { %244 = vst.msk [vmem:[#allocation5] sm:$0xff] %vm35_vm0, %v242_v55 }
 0x248   :  { %v255_v4 = vld [vmem:[#allocation5] sm:$0xff] }
 0x249   :  { %316 = vrcp.f32 %v255_v4 }
 0x253   :  { %v317_v17 = vpop.eup %316 }
 0x29e   :  { %v241_v59 = vpop.xlane.xlu1 %240 }
 0x29f   :  { %v243_v60 = vadd.f32 %v241_v59, %v235_v58 }
 0x2a1   :  { %245 = vst.msk [vmem:[#allocation5 + $0x8] sm:$0xff] %vm35_vm0, %v243_v60 }
 0x2a4   :  { %v211_v1 = vpop.xlane.xlu0 %210 }
 0x2a5   :  { %v215_v3 = vadd.f32 %v211_v1, %v207_v63 }
 0x2a7   :  { %218 = vst.msk [vmem:[#allocation3] sm:$0xff] %vm35_vm0, %v215_v3 }
 0x2a8   :  { %v214_v6 = vpop.xlane.xlu1 %213  ;;  %v256_v10 = vld [vmem:[#allocation5 + $0x8] sm:$0xff] }
 0x2a9   :  { %v216_v7 = vadd.f32 %v214_v6, %v208_v5 }
 0x2ab   :  { %219 = vst.msk [vmem:[#allocation3 + $0x8] sm:$0xff] %vm35_vm0, %v216_v7 }
 0x2ac   :  { %v226_v9 = vpop.xlane.xlu1 %225 }
 0x2ad   :  { %v230_v11 = vadd.f32 %v226_v9, %v220_v8 }
 0x2ae   :  { %v263_v12 = vld [vmem:[#allocation3] sm:$0xff] }
 0x2af   :  { %318 = vlog2.f32 %v263_v12  ;;  %232 = vst.msk [vmem:[#allocation4] sm:$0xff] %vm35_vm0, %v230_v11 }
 0x2b0   :  { %320 = vrcp.f32 %v256_v10  ;;  %v229_v14 = vpop.xlane.xlu1 %228 }
 0x2b1   :  { %v231_v15 = vadd.f32 %v229_v14, %v221_v13 }
 0x2b2   :  { %v264_v16 = vld [vmem:[#allocation3 + $0x8] sm:$0xff] }
 0x2b3   :  { %322 = vlog2.f32 %v264_v16  ;;  %233 = vst.msk [vmem:[#allocation4 + $0x8] sm:$0xff] %vm35_vm0, %v231_v15 }
 0x2b6   :  { %v253_v18 = vld [vmem:[#allocation4] sm:$0xff] }
 0x2b7   :  { %v258_v19 = vmul.f32 %v317_v17, %v253_v18 }
 0x2b9   :  { %v319_v21 = vpop.eup %318  ;;  %v261_v22 = vsub.f32 %v258_v19, %v251_v20 }
 0x2ba   :  { %v321_v23 = vpop.eup %320  ;;  %v266_v24 = vmul.f32 0.6931472, %v319_v21  ;;  %v254_v25 = vld [vmem:[#allocation4 + $0x8] sm:$0xff] }
 0x2bb   :  { %v260_v26 = vmul.f32 %v321_v23, %v254_v25 }
 0x2bc   :  { %v269_v28 = vsub.f32 %v261_v22, %v266_v24 }
 0x2bd   :  { %v323_v29 = vpop.eup %322  ;;  %v262_v30 = vsub.f32 %v260_v26, %v252_v27 }
 0x2be   :  { %v268_v31 = vmul.f32 0.6931472, %v323_v29  ;;  %v271_v32 = vmul.f32 -1.0, %v269_v28 }
 0x2c0   :  { %273 = vst.msk [vmem:[%s454_s4] sm:$0xff] %vm35_vm0, %v271_v32  ;;  %v270_v33 = vsub.f32 %v262_v30, %v268_v31 }
 0x2c2   :  { %v272_v34 = vmul.f32 -1.0, %v270_v33 }
 0x2c4   :  { %274 = vst.msk [vmem:[%s454_s4 + $0x8] sm:$0xff] %vm35_vm0, %v272_v34 }
 0x2c5   :  { %279 = vsyncpa [#allocation7], 1 }

</bundles_post_ra>
